<compile_context>
chip_gen: v7x
topology: tpu7x:2x2x1
jax: 0.10.0
libtpu: 0.0.40
codegen_flags: <defaults>
</compile_context>

<pallas_src>
import math

import jax
import jax.numpy as jnp
import numpy as np
from jax import lax
from jax.experimental import pallas as pl
from jax.experimental.pallas import tpu as pltpu


def _energy_kernel(x_ref, mu_ref, kb_ref, out_ref):
    x = x_ref[...]                              # (bb, T, E), input dtype
    bb, T, E = x.shape
    K = mu_ref.shape[0]

    k = kb_ref[0]                               # SMEM scalars
    b = kb_ref[1]

    xf = x.astype(jnp.float32)                  # f32 for the elementwise epilogue
    x_bf = x.astype(jnp.bfloat16)               # MXU operand
    mu_bf = mu_ref[...]                         # (K, E) bf16, already * 1/sqrt(E)

    # --- att: one un-batched MXU call over all bb*T rows ---------------------
    # Better MXU row fill than bb tiny (K,E)x(E,T) matmuls, no (bb,K,E) mu
    # broadcast, no per-step mu cast.
    att = lax.dot_general(
        x_bf.reshape(bb * T, E), mu_bf,
        (((1,), (1,)), ((), ())),
        preferred_element_type=jnp.float32).reshape(bb, T, K)

    # --- max-stabilized, UNnormalized softmax over T (all f32 elementwise) ---
    m = jnp.max(att, axis=1, keepdims=True)     # (bb, 1, K)
    e = jnp.exp(att - m)                        # (bb, T, K)
    s = jnp.sum(e, axis=1, keepdims=True)       # (bb, 1, K)
    # Both 1/s factors with a single EUP approx reciprocal (does not square
    # the reciprocal approximation error).
    inv_s2 = pl.reciprocal(s * s, approx=True)  # (bb, 1, K)

    e_bf = e.astype(jnp.bfloat16)

    # sel_raw[b,k,e] = sum_t e[b,t,k] * x[b,t,e]   (unnormalized "sel")
    sel_raw = lax.dot_general(
        e_bf, x_bf,
        (((1,), (1,)), ((0,), (0,))),
        preferred_element_type=jnp.float32)     # (bb, K, E)

    # Fold both 1/s factors and the scalar k into the small (bb,K,E) operand
    # rather than scaling any (bb,T,*) tensor.  Middle dim of inv_s2 is 1, so
    # the reshape is a pure reinterpretation of a tiny array.
    scale = inv_s2.reshape(bb, K, 1) * k
    rhs_bf = (sel_raw * scale).astype(jnp.bfloat16)

    # dx[b,t,e] = sum_k softmax(att)[b,k,t] * sel[b,k,e]
    #           = sum_k e[b,t,k] * sel_raw[b,k,e] / s[b,k]^2   (k folded in).
    # NOTE: e is consumed both t-contracted (above) and k-contracted (here),
    # so one operand transpose is inherent; explicit dimension_numbers let
    # Mosaic place it instead of forcing a layout through einsum.
    dx = lax.dot_general(
        e_bf, rhs_bf,
        (((2,), (1,)), ((0,), (0,))),
        preferred_element_type=jnp.float32)     # (bb, T, E)

    # out = k*(x + dx_true) + b, with k already folded into dx.
    out_ref[...] = (k * xf + dx + b).astype(out_ref.dtype)


def _vmem_limit_bytes():
    """Generation-aware scoped-VMEM limit.

    v5e/v6e have 128 MiB physical VMEM per TensorCore, v7x only 64 MiB; keep
    comfortable headroom for compiler scratch and double-buffering.
    """
    try:
        kind = jax.devices()[0].device_kind.lower()
    except Exception:
        kind = ""
    if "v7" in kind:
        return 48 * 1024 * 1024
    if "v5" in kind or "v6" in kind:
        return 96 * 1024 * 1024
    return 32 * 1024 * 1024                     # conservative fallback


def _pick_block_b(B, T, E, K, vmem_limit_bytes):
    """Batch elements per grid step.

    Large enough to amortize the ~0.35us/step pipeline overhead, small enough
    that ALL live intermediates (not just the BlockSpec tiles) fit under the
    scoped-VMEM limit with headroom, and capped so the grid keeps >= 2 steps
    (lets megacore / v7x dual-TensorCore sharding of the batch axis bite).
    """
    per_b = T * E * (4 + 2 + 4 + 4 * 4)   # x f32 + bf16, dx, dbl-buffered in+out blocks
    per_b += K * T * (4 + 4 + 2)          # att, e, e_bf
    per_b += K * E * (4 + 4 + 2)          # sel_raw, scaled rhs (f32 + bf16)
    budget = vmem_limit_bytes // 2        # leave compiler / pipeline headroom
    bb = max(1, min(B, budget // max(per_b, 1)))
    if B >= 2:
        bb = min(bb, (B + 1) // 2)        # keep at least 2 grid steps
    return bb


def first_order_low_rank_energy(x, mu, k_param, b_param):
    """x: (B, T, E) (f32 or bf16); mu: (K, E) unscaled Linear weight; k/b scalars."""
    B, T, E = x.shape
    K = mu.shape[0]

    vmem_limit = _vmem_limit_bytes()
    bb = _pick_block_b(B, T, E, K, vmem_limit)

    # Pad the batch so an awkward/prime B never degenerates to bb=1 blocks;
    # padded rows compute finite values and are sliced off below.
    Bp = math.ceil(B / bb) * bb
    xp = x if Bp == B else jnp.pad(x, ((0, Bp - B), (0, 0), (0, 0)))

    kb = jnp.stack([jnp.asarray(k_param, jnp.float32),
                    jnp.asarray(b_param, jnp.float32)])          # (2,) -> SMEM
    # Fold 1/sqrt(E) into mu once and pre-cast to bf16 (halves mu DMA bytes;
    # no per-step cast/broadcast inside the kernel).
    mu_bf = (mu.astype(jnp.float32) * (1.0 / math.sqrt(E))).astype(jnp.bfloat16)

    out = pl.pallas_call(
        _energy_kernel,
        out_shape=jax.ShapeDtypeStruct((Bp, T, E), x.dtype),
        grid_spec=pltpu.PrefetchScalarGridSpec(
            num_scalar_prefetch=0,
            grid=(Bp // bb,),
            in_specs=[
                pl.BlockSpec((bb, T, E), lambda i: (i, 0, 0)),       # x
                pl.BlockSpec((K, E), lambda i: (0, 0)),              # mu/sqrt(E), bf16
                pl.BlockSpec(memory_space=pltpu.MemorySpace.SMEM),   # [k, b]
            ],
            out_specs=pl.BlockSpec((bb, T, E), lambda i: (i, 0, 0)),
        ),
        compiler_params=pltpu.CompilerParams(
            # "parallel" lets the batch axis shard across cores where the
            # generation supports it; pltpu.CORE_PARALLEL / pl.core_map is the
            # explicit v7x dual-TC variant if per-core control is needed.
            dimension_semantics=("parallel",),
            vmem_limit_bytes=vmem_limit),
    )(xp, mu_bf, kb)

    return out[:B] if Bp != B else out


def ref_forward(x, mu, bias, k_param, b_param, w_kedr, w_kedl):
    """Pure-JAX f32 mirror of the PyTorch forward (correctness check)."""
    B, T, E = x.shape
    att = jnp.einsum('ke,bte->bkt', mu, x / (E ** 0.5))
    part = jax.scipy.special.logsumexp(att, axis=-1)             # (B, K)
    att = jax.nn.softmax(att, axis=-1)                           # (B, K, T)
    sel = jnp.einsum('bkt,bte->bke', att, x)                     # (B, K, E)
    lre = jax.nn.sigmoid(part - bias)[:, :, None]
    sel = lre * sel + (1.0 - lre) * sel                          # exact no-op
    # Dead-code branch from the reference module (result never used):
    xr = jax.nn.relu(sel.reshape(B, -1) @ w_kedr.T)
    dsel = (xr @ w_kedl.T).reshape(sel.shape)
    del dsel
    dx = jnp.einsum('bkt,bke->bte', att, sel)                    # (B, T, E)
    out = x + dx
    return k_param * out + b_param


if __name__ == "__main__":
    # Module dims: K clusters, E embedding, D low-rank; sequence length T.
    B, T, E, K, D = 2, 8, 32, 8, 16

    key = jax.random.PRNGKey(0)
    kx, kmu, kbias, kr, kl = jax.random.split(key, 5)

    # Deterministic "nn.Linear"-style init (uniform +-1/sqrt(fan_in)).
    bnd_e = 1.0 / np.sqrt(E)
    mu = jax.random.uniform(kmu, (K, E), jnp.float32, -bnd_e, bnd_e)       # Linear(E,K).weight
    bias = jax.random.uniform(kbias, (1, K), jnp.float32, -bnd_e, bnd_e)   # Linear(E,K).bias[None]
    w_kedr = jax.random.uniform(kr, (D, K * E), jnp.float32,
                                -1.0 / np.sqrt(K * E), 1.0 / np.sqrt(K * E))
    w_kedl = jax.random.uniform(kl, (K * E, D), jnp.float32,
                                -1.0 / np.sqrt(D), 1.0 / np.sqrt(D))
    # Non-trivial k/b to exercise the scalar-folding paths in the kernel.
    k_param = jnp.float32(0.75)
    b_param = jnp.float32(0.125)

    x = jax.random.normal(kx, (B, T, E), jnp.float32)

    out = first_order_low_rank_energy(x, mu, k_param, b_param)
    out = jax.block_until_ready(out)

    ref = ref_forward(x, mu, bias, k_param, b_param, w_kedr, w_kedl)
    # Tolerance loosened vs. pure f32: bf16 MXU operands + EUP approximate
    # reciprocal perturb low-order bits.
    np.testing.assert_allclose(np.asarray(out), np.asarray(ref),
                               rtol=2e-2, atol=2e-2)
    print("KERNEL_OK")
</pallas_src>

<mosaic_0001>
module attributes {stable_mosaic.version = 11 : i64} {
  func.func @_energy_kernel(%arg0: i32, %arg1: memref<1x8x32xf32, #tpu.memory_space<vmem>>, %arg2: memref<8x32xbf16, #tpu.memory_space<vmem>>, %arg3: memref<2xf32, #tpu.memory_space<smem>>, %arg4: memref<1x8x32xf32, #tpu.memory_space<vmem>>) attributes {dimension_semantics = [#tpu.dimension_semantics<parallel>], iteration_bounds = array<i64: 2>, scalar_prefetch = 0 : i64, scratch_operands = 0 : i64, tpu.core_type = #tpu.core_type<tc>, window_params = [{transform_indices = @transform_0, window_bounds = array<i64: 1, 8, 32>}, {pipeline_mode = #tpu.pipeline_mode<synchronous>, transform_indices = @transform_1, window_bounds = array<i64: 8, 32>}, {transform_indices = @transform_2, window_bounds = array<i64: 2>}, {transform_indices = @transform_3, window_bounds = array<i64: 1, 8, 32>}]} {
    %c0 = arith.constant 0 : index
    %c0_0 = arith.constant 0 : index
    %c0_1 = arith.constant 0 : index
    %0 = vector.load %arg1[%c0, %c0_0, %c0_1] : memref<1x8x32xf32, #tpu.memory_space<vmem>>, vector<1x8x32xf32>
    %c0_2 = arith.constant 0 : index
    %1 = memref.load %arg3[%c0_2] : memref<2xf32, #tpu.memory_space<smem>>
    %c1 = arith.constant 1 : index
    %2 = memref.load %arg3[%c1] : memref<2xf32, #tpu.memory_space<smem>>
    %3 = arith.truncf %0 : vector<1x8x32xf32> to vector<1x8x32xbf16>
    %c0_3 = arith.constant 0 : index
    %c0_4 = arith.constant 0 : index
    %4 = vector.load %arg2[%c0_3, %c0_4] : memref<8x32xbf16, #tpu.memory_space<vmem>>, vector<8x32xbf16>
    %5 = vector.shape_cast %3 : vector<1x8x32xbf16> to vector<8x32xbf16>
    %cst = arith.constant dense<0.000000e+00> : vector<8x8xf32>
    %6 = tpu.matmul %5, %4, %cst {dimension_numbers = #tpu.dot_dimension_numbers<[1], [1], [0], [0], [0, 0, 1, 0], [], []>} : vector<8x32xbf16>, vector<8x32xbf16>, vector<8x8xf32> -> vector<8x8xf32>
    %7 = vector.shape_cast %6 : vector<8x8xf32> to vector<1x8x8xf32>
    %cst_5 = arith.constant dense<0xFF800000> : vector<1x8xf32>
    %8 = vector.multi_reduction <maximumf>, %7, %cst_5 [1] : vector<1x8x8xf32> to vector<1x8xf32>
    %9 = vector.shape_cast %8 : vector<1x8xf32> to vector<1x1x8xf32>
    %10 = vector.broadcast %9 : vector<1x1x8xf32> to vector<1x8x8xf32>
    %11 = arith.subf %7, %10 : vector<1x8x8xf32>
    %12 = math.exp %11 : vector<1x8x8xf32>
    %cst_6 = arith.constant dense<0.000000e+00> : vector<1x8xf32>
    %13 = vector.multi_reduction <add>, %12, %cst_6 [1] : vector<1x8x8xf32> to vector<1x8xf32>
    %14 = vector.shape_cast %13 : vector<1x8xf32> to vector<1x1x8xf32>
    %15 = arith.mulf %14, %14 : vector<1x1x8xf32>
    %16 = tpu.reciprocal %15 {approx = true} : vector<1x1x8xf32> -> vector<1x1x8xf32>
    %17 = arith.truncf %12 : vector<1x8x8xf32> to vector<1x8x8xbf16>
    %cst_7 = arith.constant dense<0.000000e+00> : vector<1x8x32xf32>
    %18 = tpu.matmul %17, %3, %cst_7 {dimension_numbers = #tpu.dot_dimension_numbers<[1], [1], [2], [2], [0, 0, 0, 2, 1, 2], [0], [0]>} : vector<1x8x8xbf16>, vector<1x8x32xbf16>, vector<1x8x32xf32> -> vector<1x8x32xf32>
    %19 = vector.shape_cast %16 : vector<1x1x8xf32> to vector<1x8x1xf32>
    %20 = vector.broadcast %1 : f32 to vector<1x8x1xf32>
    %21 = arith.mulf %19, %20 : vector<1x8x1xf32>
    %22 = vector.broadcast %21 : vector<1x8x1xf32> to vector<1x8x32xf32>
    %23 = arith.mulf %18, %22 : vector<1x8x32xf32>
    %24 = arith.truncf %23 : vector<1x8x32xf32> to vector<1x8x32xbf16>
    %cst_8 = arith.constant dense<0.000000e+00> : vector<1x8x32xf32>
    %25 = tpu.matmul %17, %24, %cst_8 {dimension_numbers = #tpu.dot_dimension_numbers<[2], [1], [1], [2], [0, 0, 0, 1, 1, 2], [0], [0]>} : vector<1x8x8xbf16>, vector<1x8x32xbf16>, vector<1x8x32xf32> -> vector<1x8x32xf32>
    %26 = vector.broadcast %1 : f32 to vector<1x8x32xf32>
    %27 = arith.mulf %26, %0 : vector<1x8x32xf32>
    %28 = arith.addf %27, %25 : vector<1x8x32xf32>
    %29 = vector.broadcast %2 : f32 to vector<1x8x32xf32>
    %30 = arith.addf %28, %29 : vector<1x8x32xf32>
    %c0_9 = arith.constant 0 : index
    %c0_10 = arith.constant 0 : index
    %c0_11 = arith.constant 0 : index
    %31 = vector.load %arg4[%c0_9, %c0_10, %c0_11] : memref<1x8x32xf32, #tpu.memory_space<vmem>>, vector<1x8x32xf32>
    tpu.vector_store %arg4[%c0_9, %c0_10, %c0_11], %30 {strides = array<i32>} : memref<1x8x32xf32, #tpu.memory_space<vmem>>, vector<1x8x32xf32>,
    return
  }
  func.func @transform_0(%arg0: i32) -> (i32, i32, i32) {
    %c0_i32 = arith.constant 0 : i32
    %c0_i32_0 = arith.constant 0 : i32
    %c0_i32_1 = arith.constant 0 : i32
    return %arg0, %c0_i32, %c0_i32_0 : i32, i32, i32
  }
  func.func @transform_1(%arg0: i32) -> (i32, i32) {
    %c0_i32 = arith.constant 0 : i32
    %c0_i32_0 = arith.constant 0 : i32
    %c0_i32_1 = arith.constant 0 : i32
    return %c0_i32, %c0_i32_0 : i32, i32
  }
  func.func @transform_2(%arg0: i32) -> i32 {
    %c0_i32 = arith.constant 0 : i32
    %c0_i32_0 = arith.constant 0 : i32
    return %c0_i32 : i32
  }
  func.func @transform_3(%arg0: i32) -> (i32, i32, i32) {
    %c0_i32 = arith.constant 0 : i32
    %c0_i32_0 = arith.constant 0 : i32
    %c0_i32_1 = arith.constant 0 : i32
    return %arg0, %c0_i32, %c0_i32_0 : i32, i32, i32
  }
}

</mosaic_0001>

<bundles_post_ra>
// kernel: tpu_custom_call.1
= control target key start
LH: loop header
LB: loop body
LE: loop exit
PB: predicated region body
PF: predicated region fallthrough
CT: control target
= control target key end

     0   :  { %8 = vsyncpa [#allocation3], 0  ;;  %s1039_s0 = inlined_call_operand.hbm [shape: f32[2,8,32], index: 0, kind: input, shape index: {}]   ;;  %s1040_s1 = inlined_call_operand.hbm [shape: bf16[8,32], index: 1, kind: input, shape index: {}]   ;;  %s1041_s2 = inlined_call_operand.vmem [shape: f32[2], index: 2, kind: input, shape index: {}]   ;;  %s1042_s3 = inlined_call_operand.hbm [shape: f32[2,8,32], index: 3, kind: output, shape index: {}]  }
   0x1   :  { %10 = vsyncpa [#allocation3 + $0x1], 0 }
   0x2   :  { %11 = vsyncpa [#allocation7], 0 }
   0x3   :  { %12 = vsyncpa [#allocation5], 0 }
   0x4   :  { %13 = vsyncpa [#allocation4], 0 }
   0x5   :  { %15 = vsyncpa [#allocation4 + $0x1], 0  ;;  %s806_s12 = smov 0   ;;  %s808_s13 = smov 0  }
   0x6   :  { %s810_s14 = smov 0   ;;  %s812_s15 = smov 0  }
   0x7 LB: > { %s827_s16 = sadd.s32 4294967295, %s778_s15   ;;  %s513_s17 = sadd.s32 4294967294, %s778_s15   ;;  %s778_s15 = sphi %s812_s15, %s1064_s15   ;;  %s774_s14 = sphi %s810_s14, %s1063_s14   ;;  %s770_s13 = sphi %s808_s13, %s1062_s13   ;;  %s766_s12 = sphi %s806_s12, %s1061_s12  }
   0x8   : > { %p41_p0 = scmp.ne.s32.totalorder %s770_s13, %s766_s12  ;;  %p1043_p1 = scmp.eq.s32.totalorder %s827_s16, 0 }
   0x9   : > { %p113_p3 = scmp.eq.s32.totalorder %s513_s17, 1  ;;  %p514_p5 = scmp.ge.s32.totalorder %s778_s15, 1 }
   0xa   : > { %p836_p4 = por %p1043_p1, %p41_p0  ;;  %p120_p7 = scmp.lt.s32.totalorder %s778_s15, 3 }
   0xb   : > { %p841_p6 = por %p113_p3, %p41_p0  ;;  %s780_s21 = smov [#allocation6]  }
   0xc   : > { %s1046_s18 = scalar_select %p836_p4, 1, 0 }
   0xd   : > { %s1047_s19 = scalar_select %p841_p6, 1, 0 }
   0xe   : > { %p846_p8 = pnand %p514_p5, %p120_p7  ;;  %s133_s22 = sshll.u32 %s780_s21, 4  ;;  %s134_s22 = int_to_ptr.vmem [resolvable:$true] %s133_s22 }
   0xf   : > { %s144_s25 = sshll.u32 %s1041_s2, 4  ;;  %s865_s27 = sadd.s32 1, %s778_s15   ;;  %s856_s25 = int_to_ptr.vmem [resolvable:$true] %s144_s25 }
  0x10   : > { %s1048_s20 = scalar_select %p846_p8, 1, 0 }
  0x11   : > { %p569_p10 = pneg %p846_p8  ;;  %s25_s28 = ssub.s32 %s778_s15, %s865_s27 }
  0x12   : > { %s631_s4 = scalar_lea.hbm %s1040_s1, 64 }
  0x13   : > { %p860_p11 = pnand %p569_p10, %p1043_p1  ;;  %p632_p12 = scmp.ne.s32.totalorder %s1040_s1, %s631_s4 }
  0x14   : > { %p638_p5 = scmp.lt.u32.totalorder %s631_s4, %s1040_s1 }
  0x15   : > { %p633_p13 = pneg %p860_p11 }
  0x17   : > { %p634_p0 = pnand %p633_p13, %p632_p12 }
  0x19   : > { %p635_p3 = pneg %p634_p0 }
  0x1b   : > { %p640_p7 = pnand %p638_p5, %p635_p3 }
  0x1d   : > { %643 = shalt.err (!%p640_p7)
}
  0x1e   : > { %s644_s9 = scalar_lea.vmem %s134_s22, 64  ;;  %p652_p2 = scmp.lt.s32.totalorder %s134_s22, %s134_s22 }
  0x1f   : > { %p645_p10 = scmp.ne.s32.totalorder %s134_s22, %s644_s9  ;;  %p653_p6 = scmp.lt.s32.totalorder %s644_s9, %s644_s9 }
  0x21   : > { %p647_p9 = pnand %p645_p10, %p633_p13  ;;  %p654_p4 = por %p653_p6, %p652_p2 }
  0x23   : > { %p648_p1 = pneg %p647_p9 }
  0x25   : > { %p655_p8 = pnand %p654_p4, %p648_p1 }
  0x27   : > { %658 = shalt.err (!%p655_p8)
}
  0x28   : > { %572 = dma.hbm_to_vmem [thread:$0]  (!%p860_p11), %s1040_s1, 64, %s134_s22, [#allocation7]  }
  0x29   : > { %s659_s17 = scalar_lea.vmem %s856_s25, 16  ;;  %p667_p2 = scmp.lt.s32.totalorder %s856_s25, %s856_s25 }
  0x2a   : > { %p660_p12 = scmp.ne.s32.totalorder %s856_s25, %s659_s17  ;;  %p668_p1 = scmp.lt.s32.totalorder %s659_s17, %s659_s17 }
  0x2c   : > { %p662_p9 = pnand %p660_p12, %p633_p13  ;;  %p669_p4 = por %p668_p1, %p667_p2 }
  0x2e   : > { %p663_p0 = pneg %p662_p9 }
  0x30   : > { %p670_p6 = pnand %p669_p4, %p663_p0 }
  0x32   : > { %673 = shalt.err (!%p670_p6)
}
  0x33   : > { %s781_s21 = smov [#allocation8]   ;;  %p26_p8 = scmp.eq.s32.totalorder %s25_s28, 0 }
  0x34   : > { %575 = dma.vmem_to_smem (!%p860_p11), %s856_s25, 16, %s781_s21, [#allocation5]  }
  0x35   : > { %s28_s22 = sadd.s32 1, %s774_s14  ;;  %p35_p13 = scmp.ne.s32.totalorder %s774_s14, %s770_s13 }
  0x36   : > { %p36_p3 = scmp.eq.s32.totalorder %s778_s15, 0  ;;  %p1050_p7 = scmp.eq.s32.totalorder %s827_s16, 1 }
  0x37   : > { %s909_s23 = scalar_select %p26_p8, %s774_s14, %s28_s22  }
  0x38   : > { %p37_p5 = por %p36_p3, %p35_p13  ;;  %p913_p10 = por %p1050_p7, %p35_p13 }
  0x39   : > { %p586_p12 = scmp.lt.s32.totalorder %s778_s15, 2  ;;  %s155_s26 = sand.u32 1, %s774_s14  }
  0x3a   : > { %s518_s29 = sshll.u32 %s155_s26, 3  ;;  %s519_s30 = sshll.u32 %s778_s15, 7 }
  0x3b   : > { %s923_s25 = scalar_lea.hbm %s1039_s0, %s519_s30  ;;  %s159_s28 = scalar_lea.vmem [#allocation2], %s518_s29 }
  0x3c   : > { %s166_s6 = sshll.u32 %s159_s28, 4  ;;  %p927_p11 = pnand %p586_p12, %p37_p5  ;;  %s925_s6 = int_to_ptr.vmem [resolvable:$true] %s166_s6 }
  0x3d   : > { %s156_s8 = scalar_lea.sflag [#allocation3], %s155_s26  ;;  %s674_s9 = scalar_lea.hbm %s923_s25, 128 }
  0x3e   : > { %p675_p9 = scmp.ne.s32.totalorder %s923_s25, %s674_s9  ;;  %p676_p0 = pneg %p927_p11 }
  0x3f   : > { %s679_s17 = scalar_lea.hbm %s1039_s0, 256  ;;  %p680_p4 = scmp.lt.u32.totalorder %s923_s25, %s1039_s0 }
  0x40   : > { %p677_p2 = pnand %p676_p0, %p675_p9  ;;  %p681_p6 = scmp.lt.u32.totalorder %s679_s17, %s674_s9 }
  0x41   : > { %p683_p13 = scmp.lt.u32.totalorder %s674_s9, %s923_s25 }
  0x42   : > { %p678_p1 = pneg %p677_p2  ;;  %p682_p8 = por %p681_p6, %p680_p4 }
  0x44   : > { %p684_p3 = por %p683_p13, %p682_p8 }
  0x46   : > { %p685_p5 = pnand %p684_p3, %p678_p1 }
  0x48   : > { %688 = shalt.err (!%p685_p5)
}
  0x49   : > { %s689_s26 = scalar_lea.vmem %s925_s6, 128  ;;  %s782_s29 = smov [#allocation2]  }
  0x4a   : > { %p690_p7 = scmp.ne.s32.totalorder %s925_s6, %s689_s26  ;;  %s694_s30 = sshll.u32 %s782_s29, 4  ;;  %s695_s30 = int_to_ptr.vmem [resolvable:$false] %s694_s30 }
  0x4b   : > { %s696_s4 = scalar_lea.vmem %s695_s30, 256  ;;  %p697_p2 = scmp.lt.s32.totalorder %s925_s6, %s695_s30 }
  0x4c   : > { %p692_p12 = pnand %p690_p7, %p676_p0  ;;  %p698_p4 = scmp.lt.s32.totalorder %s696_s4, %s689_s26 }
  0x4e   : > { %p693_p9 = pneg %p692_p12  ;;  %p699_p6 = por %p698_p4, %p697_p2 }
  0x50   : > { %p700_p8 = pnand %p699_p6, %p693_p9 }
  0x52   : > { %703 = shalt.err (!%p700_p8)
}
  0x53   : > { %579 = dma.hbm_to_vmem [thread:$0]  (!%p927_p11), %s923_s25, 128, %s925_s6, %s156_s8  }
  0x54   : > { %p1053_p1 = scmp.ne.s32.totalorder %s1048_s20, 0 }
  0x55   : > { %s959_s5 = sand.u32 (!%p1053_p1), 1, %s770_s13   ;;  %p1054_p0 = scmp.ne.s32.totalorder (!%p1053_p1), %s1046_s18, 0 }
  0x56   : > { %175 = sbr.rel (%p1053_p1) target bundleno = 907 (0x38b), region = 32  ;;  %s521_s28 = sshll.u32 (!%p1053_p1), %s959_s5, 3 }
  0x57   : > { %s178_s9 = scalar_lea.sflag (!%p1053_p1), [#allocation3], %s959_s5  ;;  %s181_s10 = scalar_lea.vmem (!%p1053_p1), [#allocation2], %s521_s28 }
  0x5d   : > { %749 = dma.done.wait (%p1054_p0), %s178_s9, 128  }
  0x5e   : > { %751 = vsyncadd (%p1054_p0), %s178_s9, 4294967168  ;;  %p1055_p11 = scmp.eq.s32.totalorder %s827_s16, 0 }
  0x60   : > { %753 = dma.done.wait (%p1055_p11), [#allocation7], 64   ;;  %p1056_p13 = pmov %p1055_p11 }
  0x61   : > { %p1057_p3 = pmov %p1055_p11 }
  0x62   : > { %755 = vsyncadd (%p1056_p13), [#allocation7], 4294967232 }
  0x63   : > { %757 = dma.done.wait (%p1057_p3), [#allocation5], 16   ;;  %p1058_p5 = pmov %p1057_p3 }
  0x65   : > { %759 = vsyncadd (%p1058_p5), [#allocation5], 4294967280 }
  0x66   : > { %194 = sfence }
  0x67   : > { %v218_v0 = vld [vmem:[#allocation6] sm:$0xf]  ;;  %vm219_vm0 = vcmask 261120   ;;  %v783_v1 = vmov 0.0   ;;  %vm784_vm1 = vmmov 0   ;;  %v214_v3 = vld [vmem:[%s181_s10] sm:$0xff] }
  0x68   : > { %539 = vmatprep.subr.bf16.mxu0 %v783_v1  ;;  %v224_v2 = vsel %vm219_vm0, %v218_v0, 0  ;;  %541 = vmatprep.mubr.msk.bf16.mxu0 %vm784_vm1, %v783_v1  ;;  %v217_v4 = vpack.c.bf16 %v214_v3, %v214_v3  ;;  %vm306_vm2 = vcmask 1043456   ;;  %vm266_vm3 = vcmask 64512   ;;  %s215_s18 = sld [smem:[#allocation8]]  ;;  %s525_s20 = sld [smem:[#allocation8 + $0x1]] }
  0x69   : > { %540 = vmatpush3.bf16.xpose.msra.mxu0 %v224_v2  ;;  %545 = vmatprep.subr.bf16.mxu1 %v783_v1  ;;  %s530_s25 = sshll.u32 %s827_s16, 7  ;;  %s212_s6 = scalar_lea.vmem [#allocation9], %s521_s28 }
  0x6a   : > { %547 = vmatprep.mubr.msk.bf16.mxu1 %vm784_vm1, %v783_v1  ;;  %v307_v5 = vsel %vm306_vm2, %v217_v4, 0  ;;  %s421_s7 = sshll.u32 %s212_s6, 4  ;;  %s994_s17 = scalar_lea.hbm %s1042_s3, %s530_s25  ;;  %s996_s7 = int_to_ptr.vmem [resolvable:$true] %s421_s7 }
  0x6b   : > { %546 = vmatpush3.bf16.msra.mxu1 %v307_v5  ;;  %s408_s16 = scalar_lea.sflag [#allocation4], %s959_s5  ;;  %s704_s21 = scalar_lea.vmem %s996_s7, 128 }
  0x6c   : > { %551 = vmatprep.subr.bf16.mxu1 %v783_v1  ;;  %p705_p7 = scmp.ne.s32.totalorder %s996_s7, %s704_s21  ;;  %s785_s22 = smov [#allocation9]  }
  0x6d   : > { %s708_s26 = sshll.u32 %s785_s22, 4  ;;  %s709_s26 = int_to_ptr.vmem [resolvable:$false] %s708_s26 }
  0x6e   : > { %v352_v31 = vstv %s215_s18  ;;  %v404_v43 = vstv %s525_s20  ;;  %p706_p12 = pnand %p705_p7, %p913_p10  ;;  %s710_s29 = scalar_lea.vmem %s709_s26, 256 }
  0x6f   : > { %v402_v41 = vmul.f32 %v352_v31, %v214_v3  ;;  %p711_p2 = scmp.lt.s32.totalorder %s996_s7, %s709_s26  ;;  %p712_p4 = scmp.lt.s32.totalorder %s710_s29, %s704_s21 }
  0x70   : > { %542 = vmatmul.mubr.msk.bf16.vlgmr.msra.gmra.mrb[0].mxu0 %vm219_vm0, %v217_v4  ;;  %p707_p9 = pneg %p706_p12 }
  0x71   : > { %p713_p6 = por %p712_p4, %p711_p2 }
  0x73   : > { %p714_p8 = pnand %p713_p6, %p707_p9 }
 0x143   : > { %v260_v6 = vpop.f32.mrb[0].mxu0 }
 0x144   : > { %v267_v7 = vsel %vm266_vm3, %v260_v6, -inf  ;;  %v543_v8 = vpop.f32.mrb[1].mxu0 }
 0x145   : > { %v268_v9 = vrot.slane %v267_v7, 4  ;;  %v263_v10 = vpop.f32.mrb[2].mxu0 }
 0x146   : > { %v544_v11 = vpop.f32.mrb[3].mxu0 }
 0x147   : > { %v269_v12 = vmax.f32 %v267_v7, %v268_v9 }
 0x149   : > { %v270_v13 = vrot.slane %v269_v12, 2 }
 0x14b   : > { %v271_v14 = vmax.f32 %v269_v12, %v270_v13 }
 0x14d   : > { %v272_v15 = vrot.slane %v271_v14, 1 }
 0x14f   : > { %v273_v16 = vmax.f32 %v271_v14, %v272_v15 }
 0x151   : > { %v274_v17 = vsub.f32 %v260_v6, %v273_v16 }
 0x153   : > { %v275_v18 = vmul.f32 1.442695, %v274_v17 }
 0x155   : > { %627 = vpow2.f32 %v275_v18 }
 0x15f   : > { %v628_v19 = vpop.eup %627 }
 0x160   : > { %v277_v20 = vsel %vm266_vm3, %v628_v19, 0.0  ;;  %v286_v21 = vpack.c.bf16 %v628_v19, %v628_v19 }
 0x161   : > { %v278_v22 = vrot.slane %v277_v20, 4 }
 0x162   : > { %287 = vxpose.xlu0.c.b16.start.end [1/1] (short) (narrow) %v286_v21, 16 }
 0x163   : > { %v279_v23 = vadd.f32 %v278_v22, %v277_v20 }
 0x165   : > { %v280_v24 = vrot.slane %v279_v23, 2 }
 0x167   : > { %v281_v25 = vadd.f32 %v280_v24, %v279_v23 }
 0x169   : > { %v282_v26 = vrot.slane %v281_v25, 1 }
 0x16b   : > { %v283_v27 = vadd.f32 %v282_v26, %v281_v25 }
 0x16d   : > { %v284_v28 = vmul.f32 %v283_v27, %v283_v27 }
 0x16f   : > { %629 = vrcp.f32 %v284_v28 }
 0x179   : > { %v630_v29 = vpop.eup %629 }
 0x17a   : > { %350 = vbcast.lane.b32.xlu0 %v630_v29, 256 }
 0x1c8   : > { %v295_v30 = vpop.trf.xlu0 }
 0x1c9   : > { %548 = vmatmul.mubr.msk.bf16.vlgmr.msra.gmra.mrb[0].mxu1 %vm266_vm3, %v295_v30 }
 0x1ca   : > { %553 = vmatprep.mubr.msk.bf16.mxu1 %vm784_vm1, %v783_v1 }
 0x1ec   : > { %v351_v32 = vpop.permute.xlu0 %350 }
 0x1ed   : > { %v353_v33 = vmul.f32 %v352_v31, %v351_v32 }
 0x29c   : > { %v343_v34 = vpop.f32.mrb[0].mxu1 }
 0x29d   : > { %v354_v35 = vmul.f32 %v353_v33, %v343_v34  ;;  %v549_v36 = vpop.f32.mrb[1].mxu1 }
 0x29e   : > { %v346_v37 = vpop.f32.mrb[2].mxu1 }
 0x29f   : > { %v355_v38 = vpack.c.bf16 %v354_v35, %v354_v35  ;;  %v550_v39 = vpop.f32.mrb[3].mxu1 }
 0x2a1   : > { %v360_v40 = vsel %vm306_vm2, %v355_v38, 0 }
 0x2a2   : > { %552 = vmatpush3.bf16.msra.mxu1 %v360_v40 }
 0x2a5   : > { %554 = vmatmul.mubr.msk.bf16.vlgmr.msra.gmra.mrb[4].mxu1 %vm266_vm3, %v286_v21 }
 0x378   : > { %v396_v42 = vpop.f32.mrb[4].mxu1 }
 0x379   : > { %v403_v44 = vadd.f32 %v402_v41, %v396_v42  ;;  %v555_v45 = vpop.f32.mrb[5].mxu1 }
 0x37a   : > { %v399_v46 = vpop.f32.mrb[6].mxu1 }
 0x37b   : > { %v405_v47 = vadd.f32 %v404_v43, %v403_v44  ;;  %v556_v48 = vpop.f32.mrb[7].mxu1 }
 0x37d   : > { %406 = vst.msk [vmem:[%s212_s6] sm:$0xff] %vm219_vm0, %v405_v47 }
 0x37e   : > { %717 = shalt.err (!%p714_p8)
}
 0x37f   : > { %s718_s30 = scalar_lea.hbm %s994_s17, 128  ;;  %s722_s28 = scalar_lea.hbm %s1042_s3, 256 }
 0x380   : > { %p719_p1 = scmp.ne.s32.totalorder %s994_s17, %s718_s30  ;;  %p723_p13 = scmp.lt.u32.totalorder %s994_s17, %s1042_s3 }
 0x381   : > { %p724_p3 = scmp.lt.u32.totalorder %s722_s28, %s718_s30  ;;  %p726_p7 = scmp.lt.u32.totalorder %s718_s30, %s994_s17 }
 0x382   : > { %p720_p0 = pnand %p719_p1, %p913_p10 }
 0x383   : > { %p725_p5 = por %p724_p3, %p723_p13 }
 0x384   : > { %p721_p11 = pneg %p720_p0 }
 0x385   : > { %p727_p12 = por %p726_p7, %p725_p5 }
 0x387   : > { %p728_p9 = pnand %p727_p12, %p721_p11 }
 0x389   : > { %731 = shalt.err (!%p728_p9)
}
 0x38a   : > { %567 = dma.vmem_to_hbm [thread:$0]  (%p913_p10), %s996_s7, 128, %s994_s17, %s408_s16  }
 0x38b PF: > { %s433_s18 = sand.u32 1, %s766_s12   ;;  %p1059_p2 = scmp.ne.s32.totalorder %s1047_s19, 0 }
 0x38c   : > { %p1060_p4 = scmp.ge.s32.totalorder %s778_s15, 2  ;;  %s434_s20 = scalar_lea.sflag [#allocation4], %s433_s18 }
 0x38e   : > { %p581_p6 = pnand %p1060_p4, %p1059_p2 }
 0x390   : > { %761 = dma.done.wait (!%p581_p6), %s434_s20, 128  }
 0x391   : > { %763 = vsyncadd (!%p581_p6), %s434_s20, 4294967168  ;;  %p18_p8 = scmp.ge.s32.totalorder %s865_s27, 4   ;;  %s1061_s12 = smov %s770_s13 }
 0x392   : > { %s1062_s13 = smov %s774_s14  ;;  %s1063_s14 = smov %s909_s23 }
 0x393   : > { %s1064_s15 = smov %s865_s27  ;;  %20 = sbr.rel (!%p18_p8) target bundleno = 7 (0x7), region = 86 }
 0x39a   :  { %439 = vsyncpa [#allocation3], 1 }
 0x39b   :  { %441 = vsyncpa [#allocation3 + $0x1], 1 }
 0x39c   :  { %442 = vsyncpa [#allocation7], 1 }
 0x39d   :  { %443 = vsyncpa [#allocation4], 1 }
 0x39e   :  { %445 = vsyncpa [#allocation4 + $0x1], 1 }
 0x39f   :  { %446 = vsyncpa [#allocation5], 1 }
 0x3a0   :  { %448 = vsyncpa [#allocation5 + $0x1], 1 }

</bundles_post_ra>
